<compile_context>
chip_gen: v7x
topology: tpu7x:2x2x1
jax: 0.10.0
libtpu: 0.0.40
codegen_flags: <defaults>
</compile_context>

<pallas_src>
import functools

import numpy as np
import jax
import jax.numpy as jnp
from jax.experimental import pallas as pl
from jax.experimental.pallas import tpu as pltpu

PI = 3.1415926  # exactly the constant used by the PyTorch module

_DIMS_AVG = ((1.63, 1.53, 3.88), (1.73, 0.67, 0.88), (1.70, 0.58, 1.78))

# 8-corner sign patterns of the 3d box (used only by the pure-JAX reference)
_SX = (1., 1., -1., -1., 1., 1., -1., -1.)
_SY = (0., 0., 0., 0., 1., 1., 1., 1.)
_SZ = (1., -1., -1., 1., 1., -1., -1., 1.)


def _atan(x):
    """float32 atan via Cephes-style range reduction (max err ~1e-7 rad)."""
    sign = jnp.where(x < 0.0, -1.0, 1.0)
    ax = jnp.abs(x)
    tan3pi8 = 2.414213562373095
    tanpi8 = 0.4142135623730951
    big = ax > tan3pi8
    mid = jnp.logical_and(jnp.logical_not(big), ax > tanpi8)
    xr = jnp.where(big, -1.0 / (ax + 1e-30),
                   jnp.where(mid, (ax - 1.0) / (ax + 1.0), ax))
    base = jnp.where(big, 1.5707963267948966,
                     jnp.where(mid, 0.7853981633974483, 0.0))
    z = xr * xr
    poly = ((((8.05374449538e-2 * z - 1.38776856032e-1) * z
              + 1.99777106478e-1) * z - 3.33329491539e-1) * z * xr + xr)
    return sign * (base + poly)


def _reg3d_kernel(inv_denom, pred_ref, tgt_ref, ct_ref, mask_ref, fm_ref,
                  cls_ref, roty_ref, m_ref, o_ref):
    """Fused 3D-box decode + L1 loss.  All refs are lane-major (rows, N)."""
    pred = pred_ref[...]          # (8, N), already reg_mask-ed in the wrapper
    tgt = tgt_ref[...]            # (8, N), already reg_mask-ed in the wrapper
    mask = mask_ref[...]          # (1, N)
    fm = fm_ref[...]              # (1, N)
    cls = cls_ref[...]            # (1, N)  float class id
    g_roty_raw = roty_ref[...]    # (1, N)

    def p(i):
        return pred[i:i + 1, :]

    def g(i):
        return tgt[i:i + 1, :]

    ct_x = ct_ref[0:1, :]
    ct_y = ct_ref[1:2, :]
    M = [m_ref[k:k + 1, :] for k in range(9)]   # per-object 3x3 K^-1 @ trans^-1

    # class-dependent average dims via two selects per component
    is0 = cls == 0.0
    is1 = cls == 1.0
    a = _DIMS_AVG
    avg0 = jnp.where(is0, a[0][0], jnp.where(is1, a[1][0], a[2][0]))
    avg1 = jnp.where(is0, a[0][1], jnp.where(is1, a[1][1], a[2][1]))
    avg2 = jnp.where(is0, a[0][2], jnp.where(is1, a[1][2], a[2][2]))

    def depth_decode(off):
        return off * 16.32 + 28.01

    def loc_decode(off_x, off_y, depth):
        # loc = depth * (K^-1 @ trans^-1) @ [ct + off, 1]
        hx = ct_x + off_x
        hy = ct_y + off_y
        lx = depth * (M[0] * hx + M[1] * hy + M[2])
        ly = depth * (M[3] * hx + M[4] * hy + M[5])
        lz = depth * (M[6] * hx + M[7] * hy + M[8])
        return lx, ly, lz

    def dim_decode(o0, o1, o2):
        return jnp.exp(o0) * avg0, jnp.exp(o1) * avg1, jnp.exp(o2) * avg2

    p_depth = depth_decode(p(0))
    g_depth = depth_decode(g(0))
    p_lx, p_ly, p_lz = loc_decode(p(1), p(2), p_depth)
    g_lx, g_ly, g_lz = loc_decode(g(1), g(2), g_depth)
    p_d0, p_d1, p_d2 = dim_decode(p(3), p(4), p(5))
    g_d0, g_d1, g_d2 = dim_decode(g(3), g(4), g(5))

    p_ly = p_ly + 0.5 * p_d0
    g_ly = g_ly + 0.5 * g_d0

    # --- orientation decode (pred ori with gt locations, torch semantics) ---
    offsets = _atan(g_lx / g_lz + 1e-7)
    ori0 = p(6)
    ori1 = p(7)
    alpha = _atan(ori0 / (ori1 + 1e-7))
    alpha = jnp.where(ori1 >= 0.0, alpha - PI / 2, alpha + PI / 2)
    rotys = alpha + offsets
    rotys = jnp.where(rotys > PI, rotys - 2 * PI, rotys)
    rotys = jnp.where(rotys < -PI, rotys + 2 * PI, rotys)
    rf = fm * rotys
    rf = jnp.where(rf > 0.0, rf - PI, jnp.where(rf < 0.0, rf + PI, rf))
    rotys_all = fm * rf + (1.0 - fm) * rotys
    p_roty = mask * rotys_all
    g_roty = mask * g_roty_raw

    # --- L1 sums over the 8 box corners, collapsed via sign symmetry --------
    # corners(roty, dims, loc) = R(roty) @ [0.5*d2*SX; -d1*SY; 0.5*d0*SZ] + loc
    #   loc term: roty & dims identical -> 8 * |p_loc - g_loc|
    #   rot term: dims & loc identical  -> 4*(|a+b|+|a-b|+|c-d|+|c+d|), y = 0
    #   dim term: roty & loc identical  -> 4*(|e+f|+|e-f|+|g-h|+|g+h|+|dd1|)
    c_p, s_p = jnp.cos(p_roty), jnp.sin(p_roty)
    c_g, s_g = jnp.cos(g_roty), jnp.sin(g_roty)
    dc = c_p - c_g
    ds = s_p - s_g

    half_gd2 = 0.5 * g_d2
    half_gd0 = 0.5 * g_d0
    dd2 = 0.5 * (p_d2 - g_d2)
    dd0 = 0.5 * (p_d0 - g_d0)

    # three independent partials -> short, overlapping VALU chains
    loc_part = 8.0 * (jnp.abs(p_lx - g_lx) + jnp.abs(p_ly - g_ly)
                      + jnp.abs(p_lz - g_lz))

    ra = dc * half_gd2
    rb = ds * half_gd0
    rc = dc * half_gd0
    rd = ds * half_gd2
    rot_part = 4.0 * (jnp.abs(ra + rb) + jnp.abs(ra - rb)
                      + jnp.abs(rc - rd) + jnp.abs(rc + rd))

    de = c_g * dd2
    df = s_g * dd0
    dg = c_g * dd0
    dh = s_g * dd2
    dim_part = 4.0 * (jnp.abs(de + df) + jnp.abs(de - df)
                      + jnp.abs(dg - dh) + jnp.abs(dg + dh)
                      + jnp.abs(p_d1 - g_d1))

    total = (jnp.sum(loc_part) + jnp.sum(rot_part) + jnp.sum(dim_part)) \
        * inv_denom
    o_ref[...] = jnp.reshape(total, (1, 1))


def _inv3x3(A):
    """Closed-form (adjugate / det) inverse of a batch of 3x3 matrices."""
    a, b, c = A[:, 0, 0], A[:, 0, 1], A[:, 0, 2]
    d, e, f = A[:, 1, 0], A[:, 1, 1], A[:, 1, 2]
    g, h, i = A[:, 2, 0], A[:, 2, 1], A[:, 2, 2]
    c00 = e * i - f * h
    c01 = f * g - d * i
    c02 = d * h - e * g
    det = a * c00 + b * c01 + c * c02
    inv_det = 1.0 / det
    r0 = jnp.stack([c00, c * h - b * i, b * f - c * e], axis=-1)
    r1 = jnp.stack([c01, a * i - c * g, c * d - a * f], axis=-1)
    r2 = jnp.stack([c02, b * g - a * h, a * e - b * d], axis=-1)
    return jnp.stack([r0, r1, r2], axis=1) * inv_det[:, None, None]


def reg3d_loss(output, ind, cls_id, reg_mask, flip_mask, ct3d, reg_3d, roty,
               K, trans):
    """Pallas implementation of Reg3dLoss.forward (returns a scalar loss)."""
    B, C, H, W = output.shape
    assert C == 8
    n_objs = ind.shape[1]
    N = B * n_objs

    # ---- gather the N prediction rows in the wrapper (layout plumbing) ----
    feat = output.reshape(B, C, H * W).astype(jnp.float32)
    gidx = jnp.broadcast_to(ind.astype(jnp.int32)[:, None, :], (B, C, n_objs))
    pred = jnp.take_along_axis(feat, gidx, axis=2)            # (B, 8, n_objs)
    maskf = reg_mask.astype(jnp.float32)                      # (B, n_objs)
    pred = pred * maskf[:, None, :]                           # mask fused here
    pred = jnp.transpose(pred, (1, 0, 2)).reshape(C, N)       # (8, N)

    tgt = reg_3d.astype(jnp.float32) * maskf[..., None]       # (B, n_objs, 8)
    tgt = jnp.transpose(tgt.reshape(N, 8))                    # (8, N)

    ct = jnp.transpose(ct3d.astype(jnp.float32).reshape(N, 2))   # (2, N)
    mask_row = maskf.reshape(1, N)
    fm_row = flip_mask.astype(jnp.float32).reshape(1, N)
    cls_row = cls_id.astype(jnp.float32).reshape(1, N)
    roty_row = roty.astype(jnp.float32).reshape(1, N)

    # ---- closed-form 3x3 inverses, folded into one per-image M ------------
    extend = jnp.tile(jnp.array([[[0., 0., 1.]]], jnp.float32), (B, 1, 1))
    trans_sq = jnp.concatenate([trans.astype(jnp.float32), extend], axis=1)
    trans_inv = _inv3x3(trans_sq)                              # (B, 3, 3)
    k_inv = _inv3x3(K[:, :, :3].astype(jnp.float32))           # (B, 3, 3)
    M = jnp.matmul(k_inv, trans_inv).reshape(B, 9)             # fold the 3x3s
    m_rows = jnp.transpose(jnp.repeat(M, n_objs, axis=0))      # (9, N)

    kernel = functools.partial(_reg3d_kernel, 1.0 / (n_objs * 10.0))
    vmem = pltpu.MemorySpace.VMEM
    loss = pl.pallas_call(
        kernel,
        out_shape=jax.ShapeDtypeStruct((1, 1), jnp.float32),
        in_specs=[pl.BlockSpec(memory_space=vmem) for _ in range(8)],
        out_specs=pl.BlockSpec(memory_space=vmem),
    )(pred, tgt, ct, mask_row, fm_row, cls_row, roty_row, m_rows)
    return loss[0, 0]


def reg3d_loss_ref(output, ind, cls_id, reg_mask, flip_mask, ct3d, reg_3d,
                   roty, K, trans):
    """Pure-JAX mirror of the PyTorch forward, used for verification."""
    B, C, H, W = output.shape
    n_objs = ind.shape[1]
    feat = jnp.transpose(output, (0, 2, 3, 1)).reshape(B, H * W, C)
    gidx = jnp.broadcast_to(ind[:, :, None].astype(jnp.int32), (B, n_objs, C))
    pred = jnp.take_along_axis(feat, gidx, axis=1)
    mask_all = reg_mask[..., None].astype(jnp.float32)
    pred = (pred * mask_all).reshape(-1, 8)
    tgt = (reg_3d * mask_all).reshape(-1, 8)
    cls = cls_id.reshape(-1)

    dims_avg = jnp.array(_DIMS_AVG, jnp.float32)
    extend = jnp.tile(jnp.array([[[0., 0., 1.]]], jnp.float32), (B, 1, 1))
    trans_inv = jnp.linalg.inv(jnp.concatenate([trans, extend], axis=1))
    k_inv = jnp.linalg.inv(K[:, :, :3])
    img_idx = jnp.repeat(jnp.arange(B), n_objs)
    ti = trans_inv[img_idx]
    ki = k_inv[img_idx]
    ct = ct3d.reshape(-1, 2)

    def depth_decode(off):
        return off * 16.32 + 28.01

    def loc_decode(ctoff, depth):
        homo = jnp.concatenate([ct + ctoff, jnp.ones((ct.shape[0], 1))], axis=1)
        img = jnp.einsum('nij,nj->ni', ti, homo, precision='highest')
        img = img * depth[:, None]
        return jnp.einsum('nij,nj->ni', ki, img, precision='highest')

    def dim_decode(off):
        return jnp.exp(off) * dims_avg[cls]

    p_depth = depth_decode(pred[:, 0])
    g_depth = depth_decode(tgt[:, 0])
    p_loc = loc_decode(pred[:, 1:3], p_depth)
    g_loc = loc_decode(tgt[:, 1:3], g_depth)
    p_dim = dim_decode(pred[:, 3:6])
    g_dim = dim_decode(tgt[:, 3:6])
    p_loc = p_loc.at[:, 1].add(p_dim[:, 0] / 2)
    g_loc = g_loc.at[:, 1].add(g_dim[:, 0] / 2)

    offsets = jnp.arctan(g_loc[:, 0] / g_loc[:, 2] + 1e-7)
    alpha = jnp.arctan(pred[:, 6] / (pred[:, 7] + 1e-7))
    alpha = jnp.where(pred[:, 7] >= 0, alpha - PI / 2, alpha + PI / 2)
    rotys = alpha + offsets
    rotys = jnp.where(rotys > PI, rotys - 2 * PI, rotys)
    rotys = jnp.where(rotys < -PI, rotys + 2 * PI, rotys)
    fmv = flip_mask.reshape(-1).astype(jnp.float32)
    rf = fmv * rotys
    rf = jnp.where(rf > 0, rf - PI, jnp.where(rf < 0, rf + PI, rf))
    rotys_all = fmv * rf + (1 - fmv) * rotys
    mv = reg_mask.reshape(-1).astype(jnp.float32)
    p_roty = mv * rotys_all
    g_roty = mv * roty.reshape(-1)

    sx = jnp.array(_SX, jnp.float32)
    sy = jnp.array(_SY, jnp.float32)
    sz = jnp.array(_SZ, jnp.float32)

    def points(r, dims, loc):
        c = jnp.cos(r)[:, None]
        s = jnp.sin(r)[:, None]
        cx = 0.5 * dims[:, 2:3] * sx
        cy = -dims[:, 1:2] * sy
        cz = 0.5 * dims[:, 0:1] * sz
        bx = c * cx + s * cz + loc[:, 0:1]
        by = cy + loc[:, 1:2]
        bz = -s * cx + c * cz + loc[:, 2:3]
        return jnp.stack([bx, by, bz], axis=1)

    gt_box = points(g_roty, g_dim, g_loc)
    s1 = jnp.sum(jnp.abs(points(p_roty, g_dim, g_loc) - gt_box))
    s2 = jnp.sum(jnp.abs(points(g_roty, p_dim, g_loc) - gt_box))
    s3 = jnp.sum(jnp.abs(points(g_roty, g_dim, p_loc) - gt_box))
    return (s1 + s2 + s3) / (n_objs * 10)


if __name__ == "__main__":
    key = jax.random.PRNGKey(0)
    B, C, H, W = 2, 8, 16, 16
    n_objs = 8
    ks = jax.random.split(key, 8)

    output = 0.1 * jax.random.normal(ks[0], (B, C, H, W), jnp.float32)
    ind = jax.random.randint(ks[1], (B, n_objs), 0, H * W, jnp.int32)
    cls_id = jax.random.randint(ks[2], (B, n_objs), 0, 3, jnp.int32)
    reg_mask = (jax.random.uniform(ks[3], (B, n_objs)) < 0.8).astype(jnp.float32)
    flip_mask = (jax.random.uniform(ks[4], (B, n_objs)) < 0.5).astype(jnp.float32)
    ct3d = jax.random.uniform(ks[5], (B, n_objs, 2), jnp.float32, 0.0, float(H))
    reg_3d = 0.1 * jax.random.normal(ks[6], (B, n_objs, 8), jnp.float32)
    roty = jax.random.uniform(ks[7], (B, n_objs), jnp.float32, -PI, PI)
    K = jnp.tile(jnp.array([[[700., 0., 320., 0.],
                             [0., 700., 160., 0.],
                             [0., 0., 1., 0.]]], jnp.float32), (B, 1, 1))
    trans = jnp.tile(jnp.array([[[0.25, 0., 0.],
                                 [0., 0.25, 0.]]], jnp.float32), (B, 1, 1))

    loss = jax.jit(reg3d_loss)(output, ind, cls_id, reg_mask, flip_mask,
                               ct3d, reg_3d, roty, K, trans)
    loss = jax.block_until_ready(loss)

    ref = reg3d_loss_ref(output, ind, cls_id, reg_mask, flip_mask,
                         ct3d, reg_3d, roty, K, trans)
    np.testing.assert_allclose(np.asarray(loss), np.asarray(ref),
                               rtol=5e-3, atol=5e-3)
    print("KERNEL_OK")
</pallas_src>

<mosaic_0001>
module attributes {stable_mosaic.version = 11 : i64} {
  func.func @_reg3d_kernel(%arg0: memref<8x16xf32, #tpu.memory_space<vmem>>, %arg1: memref<8x16xf32, #tpu.memory_space<vmem>>, %arg2: memref<2x16xf32, #tpu.memory_space<vmem>>, %arg3: memref<1x16xf32, #tpu.memory_space<vmem>>, %arg4: memref<1x16xf32, #tpu.memory_space<vmem>>, %arg5: memref<1x16xf32, #tpu.memory_space<vmem>>, %arg6: memref<1x16xf32, #tpu.memory_space<vmem>>, %arg7: memref<9x16xf32, #tpu.memory_space<vmem>>, %arg8: memref<1x1xf32, #tpu.memory_space<vmem>>) attributes {dimension_semantics = [], scalar_prefetch = 0 : i64, scratch_operands = 0 : i64, tpu.core_type = #tpu.core_type<tc>} {
    %c0 = arith.constant 0 : index
    %c0_0 = arith.constant 0 : index
    %0 = vector.load %arg0[%c0, %c0_0] : memref<8x16xf32, #tpu.memory_space<vmem>>, vector<8x16xf32>
    %c0_1 = arith.constant 0 : index
    %c0_2 = arith.constant 0 : index
    %1 = vector.load %arg1[%c0_1, %c0_2] : memref<8x16xf32, #tpu.memory_space<vmem>>, vector<8x16xf32>
    %c0_3 = arith.constant 0 : index
    %c0_4 = arith.constant 0 : index
    %2 = vector.load %arg3[%c0_3, %c0_4] : memref<1x16xf32, #tpu.memory_space<vmem>>, vector<1x16xf32>
    %c0_5 = arith.constant 0 : index
    %c0_6 = arith.constant 0 : index
    %3 = vector.load %arg4[%c0_5, %c0_6] : memref<1x16xf32, #tpu.memory_space<vmem>>, vector<1x16xf32>
    %c0_7 = arith.constant 0 : index
    %c0_8 = arith.constant 0 : index
    %4 = vector.load %arg5[%c0_7, %c0_8] : memref<1x16xf32, #tpu.memory_space<vmem>>, vector<1x16xf32>
    %c0_9 = arith.constant 0 : index
    %c0_10 = arith.constant 0 : index
    %5 = vector.load %arg6[%c0_9, %c0_10] : memref<1x16xf32, #tpu.memory_space<vmem>>, vector<1x16xf32>
    %c0_11 = arith.constant 0 : index
    %c0_12 = arith.constant 0 : index
    %6 = vector.load %arg2[%c0_11, %c0_12] : memref<2x16xf32, #tpu.memory_space<vmem>>, vector<1x16xf32>
    %c1 = arith.constant 1 : index
    %c0_13 = arith.constant 0 : index
    %7 = vector.load %arg2[%c1, %c0_13] : memref<2x16xf32, #tpu.memory_space<vmem>>, vector<1x16xf32>
    %c0_14 = arith.constant 0 : index
    %c0_15 = arith.constant 0 : index
    %8 = vector.load %arg7[%c0_14, %c0_15] : memref<9x16xf32, #tpu.memory_space<vmem>>, vector<1x16xf32>
    %c1_16 = arith.constant 1 : index
    %c0_17 = arith.constant 0 : index
    %9 = vector.load %arg7[%c1_16, %c0_17] : memref<9x16xf32, #tpu.memory_space<vmem>>, vector<1x16xf32>
    %c2 = arith.constant 2 : index
    %c0_18 = arith.constant 0 : index
    %10 = vector.load %arg7[%c2, %c0_18] : memref<9x16xf32, #tpu.memory_space<vmem>>, vector<1x16xf32>
    %c3 = arith.constant 3 : index
    %c0_19 = arith.constant 0 : index
    %11 = vector.load %arg7[%c3, %c0_19] : memref<9x16xf32, #tpu.memory_space<vmem>>, vector<1x16xf32>
    %c4 = arith.constant 4 : index
    %c0_20 = arith.constant 0 : index
    %12 = vector.load %arg7[%c4, %c0_20] : memref<9x16xf32, #tpu.memory_space<vmem>>, vector<1x16xf32>
    %c5 = arith.constant 5 : index
    %c0_21 = arith.constant 0 : index
    %13 = vector.load %arg7[%c5, %c0_21] : memref<9x16xf32, #tpu.memory_space<vmem>>, vector<1x16xf32>
    %c6 = arith.constant 6 : index
    %c0_22 = arith.constant 0 : index
    %14 = vector.load %arg7[%c6, %c0_22] : memref<9x16xf32, #tpu.memory_space<vmem>>, vector<1x16xf32>
    %c7 = arith.constant 7 : index
    %c0_23 = arith.constant 0 : index
    %15 = vector.load %arg7[%c7, %c0_23] : memref<9x16xf32, #tpu.memory_space<vmem>>, vector<1x16xf32>
    %c8 = arith.constant 8 : index
    %c0_24 = arith.constant 0 : index
    %16 = vector.load %arg7[%c8, %c0_24] : memref<9x16xf32, #tpu.memory_space<vmem>>, vector<1x16xf32>
    %cst = arith.constant 0.000000e+00 : f32
    %17 = vector.broadcast %cst : f32 to vector<1x16xf32>
    %18 = arith.cmpf oeq, %4, %17 : vector<1x16xf32>
    %cst_25 = arith.constant 1.000000e+00 : f32
    %19 = vector.broadcast %cst_25 : f32 to vector<1x16xf32>
    %20 = arith.cmpf oeq, %4, %19 : vector<1x16xf32>
    %cst_26 = arith.constant 1.730000e+00 : f32
    %cst_27 = arith.constant 1.700000e+00 : f32
    %21 = vector.broadcast %cst_26 : f32 to vector<1x16xf32>
    %22 = vector.broadcast %cst_27 : f32 to vector<1x16xf32>
    %23 = arith.select %20, %21, %22 : vector<1x16xi1>, vector<1x16xf32>
    %cst_28 = arith.constant 1.630000e+00 : f32
    %24 = vector.broadcast %cst_28 : f32 to vector<1x16xf32>
    %25 = arith.select %18, %24, %23 : vector<1x16xi1>, vector<1x16xf32>
    %cst_29 = arith.constant 6.700000e-01 : f32
    %cst_30 = arith.constant 5.800000e-01 : f32
    %26 = vector.broadcast %cst_29 : f32 to vector<1x16xf32>
    %27 = vector.broadcast %cst_30 : f32 to vector<1x16xf32>
    %28 = arith.select %20, %26, %27 : vector<1x16xi1>, vector<1x16xf32>
    %cst_31 = arith.constant 1.530000e+00 : f32
    %29 = vector.broadcast %cst_31 : f32 to vector<1x16xf32>
    %30 = arith.select %18, %29, %28 : vector<1x16xi1>, vector<1x16xf32>
    %cst_32 = arith.constant 0.879999995 : f32
    %cst_33 = arith.constant 1.780000e+00 : f32
    %31 = vector.broadcast %cst_32 : f32 to vector<1x16xf32>
    %32 = vector.broadcast %cst_33 : f32 to vector<1x16xf32>
    %33 = arith.select %20, %31, %32 : vector<1x16xi1>, vector<1x16xf32>
    %cst_34 = arith.constant 3.880000e+00 : f32
    %34 = vector.broadcast %cst_34 : f32 to vector<1x16xf32>
    %35 = arith.select %18, %34, %33 : vector<1x16xi1>, vector<1x16xf32>
    %36 = vector.extract_strided_slice %0 {offsets = [0, 0], sizes = [1, 16], strides = [1, 1]} : vector<8x16xf32> to vector<1x16xf32>
    %cst_35 = arith.constant 1.632000e+01 : f32
    %37 = vector.broadcast %cst_35 : f32 to vector<1x16xf32>
    %38 = arith.mulf %36, %37 : vector<1x16xf32>
    %cst_36 = arith.constant 2.801000e+01 : f32
    %39 = vector.broadcast %cst_36 : f32 to vector<1x16xf32>
    %40 = arith.addf %38, %39 : vector<1x16xf32>
    %41 = vector.extract_strided_slice %1 {offsets = [0, 0], sizes = [1, 16], strides = [1, 1]} : vector<8x16xf32> to vector<1x16xf32>
    %cst_37 = arith.constant 1.632000e+01 : f32
    %42 = vector.broadcast %cst_37 : f32 to vector<1x16xf32>
    %43 = arith.mulf %41, %42 : vector<1x16xf32>
    %cst_38 = arith.constant 2.801000e+01 : f32
    %44 = vector.broadcast %cst_38 : f32 to vector<1x16xf32>
    %45 = arith.addf %43, %44 : vector<1x16xf32>
    %46 = vector.extract_strided_slice %0 {offsets = [1, 0], sizes = [1, 16], strides = [1, 1]} : vector<8x16xf32> to vector<1x16xf32>
    %47 = vector.extract_strided_slice %0 {offsets = [2, 0], sizes = [1, 16], strides = [1, 1]} : vector<8x16xf32> to vector<1x16xf32>
    %48 = arith.addf %6, %46 : vector<1x16xf32>
    %49 = arith.addf %7, %47 : vector<1x16xf32>
    %50 = arith.mulf %8, %48 : vector<1x16xf32>
    %51 = arith.mulf %9, %49 : vector<1x16xf32>
    %52 = arith.addf %50, %51 : vector<1x16xf32>
    %53 = arith.addf %52, %10 : vector<1x16xf32>
    %54 = arith.mulf %40, %53 : vector<1x16xf32>
    %55 = arith.mulf %11, %48 : vector<1x16xf32>
    %56 = arith.mulf %12, %49 : vector<1x16xf32>
    %57 = arith.addf %55, %56 : vector<1x16xf32>
    %58 = arith.addf %57, %13 : vector<1x16xf32>
    %59 = arith.mulf %40, %58 : vector<1x16xf32>
    %60 = arith.mulf %14, %48 : vector<1x16xf32>
    %61 = arith.mulf %15, %49 : vector<1x16xf32>
    %62 = arith.addf %60, %61 : vector<1x16xf32>
    %63 = arith.addf %62, %16 : vector<1x16xf32>
    %64 = arith.mulf %40, %63 : vector<1x16xf32>
    %65 = vector.extract_strided_slice %1 {offsets = [1, 0], sizes = [1, 16], strides = [1, 1]} : vector<8x16xf32> to vector<1x16xf32>
    %66 = vector.extract_strided_slice %1 {offsets = [2, 0], sizes = [1, 16], strides = [1, 1]} : vector<8x16xf32> to vector<1x16xf32>
    %67 = arith.addf %6, %65 : vector<1x16xf32>
    %68 = arith.addf %7, %66 : vector<1x16xf32>
    %69 = arith.mulf %8, %67 : vector<1x16xf32>
    %70 = arith.mulf %9, %68 : vector<1x16xf32>
    %71 = arith.addf %69, %70 : vector<1x16xf32>
    %72 = arith.addf %71, %10 : vector<1x16xf32>
    %73 = arith.mulf %45, %72 : vector<1x16xf32>
    %74 = arith.mulf %11, %67 : vector<1x16xf32>
    %75 = arith.mulf %12, %68 : vector<1x16xf32>
    %76 = arith.addf %74, %75 : vector<1x16xf32>
    %77 = arith.addf %76, %13 : vector<1x16xf32>
    %78 = arith.mulf %45, %77 : vector<1x16xf32>
    %79 = arith.mulf %14, %67 : vector<1x16xf32>
    %80 = arith.mulf %15, %68 : vector<1x16xf32>
    %81 = arith.addf %79, %80 : vector<1x16xf32>
    %82 = arith.addf %81, %16 : vector<1x16xf32>
    %83 = arith.mulf %45, %82 : vector<1x16xf32>
    %84 = vector.extract_strided_slice %0 {offsets = [3, 0], sizes = [1, 16], strides = [1, 1]} : vector<8x16xf32> to vector<1x16xf32>
    %85 = vector.extract_strided_slice %0 {offsets = [4, 0], sizes = [1, 16], strides = [1, 1]} : vector<8x16xf32> to vector<1x16xf32>
    %86 = vector.extract_strided_slice %0 {offsets = [5, 0], sizes = [1, 16], strides = [1, 1]} : vector<8x16xf32> to vector<1x16xf32>
    %87 = math.exp %84 : vector<1x16xf32>
    %88 = arith.mulf %87, %25 : vector<1x16xf32>
    %89 = math.exp %85 : vector<1x16xf32>
    %90 = arith.mulf %89, %30 : vector<1x16xf32>
    %91 = math.exp %86 : vector<1x16xf32>
    %92 = arith.mulf %91, %35 : vector<1x16xf32>
    %93 = vector.extract_strided_slice %1 {offsets = [3, 0], sizes = [1, 16], strides = [1, 1]} : vector<8x16xf32> to vector<1x16xf32>
    %94 = vector.extract_strided_slice %1 {offsets = [4, 0], sizes = [1, 16], strides = [1, 1]} : vector<8x16xf32> to vector<1x16xf32>
    %95 = vector.extract_strided_slice %1 {offsets = [5, 0], sizes = [1, 16], strides = [1, 1]} : vector<8x16xf32> to vector<1x16xf32>
    %96 = math.exp %93 : vector<1x16xf32>
    %97 = arith.mulf %96, %25 : vector<1x16xf32>
    %98 = math.exp %94 : vector<1x16xf32>
    %99 = arith.mulf %98, %30 : vector<1x16xf32>
    %100 = math.exp %95 : vector<1x16xf32>
    %101 = arith.mulf %100, %35 : vector<1x16xf32>
    %cst_39 = arith.constant 5.000000e-01 : f32
    %102 = vector.broadcast %cst_39 : f32 to vector<1x16xf32>
    %103 = arith.mulf %102, %88 : vector<1x16xf32>
    %104 = arith.addf %59, %103 : vector<1x16xf32>
    %cst_40 = arith.constant 5.000000e-01 : f32
    %105 = vector.broadcast %cst_40 : f32 to vector<1x16xf32>
    %106 = arith.mulf %105, %97 : vector<1x16xf32>
    %107 = arith.addf %78, %106 : vector<1x16xf32>
    %108 = arith.divf %73, %83 : vector<1x16xf32>
    %cst_41 = arith.constant 1.000000e-07 : f32
    %109 = vector.broadcast %cst_41 : f32 to vector<1x16xf32>
    %110 = arith.addf %108, %109 : vector<1x16xf32>
    %cst_42 = arith.constant 0.000000e+00 : f32
    %111 = vector.broadcast %cst_42 : f32 to vector<1x16xf32>
    %112 = arith.cmpf olt, %110, %111 : vector<1x16xf32>
    %cst_43 = arith.constant -1.000000e+00 : f32
    %cst_44 = arith.constant 1.000000e+00 : f32
    %113 = vector.broadcast %cst_43 : f32 to vector<1x16xf32>
    %114 = vector.broadcast %cst_44 : f32 to vector<1x16xf32>
    %115 = arith.select %112, %113, %114 : vector<1x16xi1>, vector<1x16xf32>
    %116 = math.absf %110 : vector<1x16xf32>
    %cst_45 = arith.constant 2.41421366 : f32
    %117 = vector.broadcast %cst_45 : f32 to vector<1x16xf32>
    %118 = arith.cmpf ogt, %116, %117 : vector<1x16xf32>
    %cst_46 = arith.constant dense<true> : vector<1x16xi1>
    %119 = arith.xori %118, %cst_46 : vector<1x16xi1>
    %cst_47 = arith.constant 0.414213568 : f32
    %120 = vector.broadcast %cst_47 : f32 to vector<1x16xf32>
    %121 = arith.cmpf ogt, %116, %120 : vector<1x16xf32>
    %122 = arith.andi %119, %121 : vector<1x16xi1>
    %cst_48 = arith.constant 1.000000e-30 : f32
    %123 = vector.broadcast %cst_48 : f32 to vector<1x16xf32>
    %124 = arith.addf %116, %123 : vector<1x16xf32>
    %cst_49 = arith.constant -1.000000e+00 : f32
    %125 = vector.broadcast %cst_49 : f32 to vector<1x16xf32>
    %126 = arith.divf %125, %124 : vector<1x16xf32>
    %cst_50 = arith.constant 1.000000e+00 : f32
    %127 = vector.broadcast %cst_50 : f32 to vector<1x16xf32>
    %128 = arith.subf %116, %127 : vector<1x16xf32>
    %cst_51 = arith.constant 1.000000e+00 : f32
    %129 = vector.broadcast %cst_51 : f32 to vector<1x16xf32>
    %130 = arith.addf %116, %129 : vector<1x16xf32>
    %131 = arith.divf %128, %130 : vector<1x16xf32>
    %132 = arith.select %122, %131, %116 : vector<1x16xi1>, vector<1x16xf32>
    %133 = arith.select %118, %126, %132 : vector<1x16xi1>, vector<1x16xf32>
    %cst_52 = arith.constant 0.785398185 : f32
    %cst_53 = arith.constant 0.000000e+00 : f32
    %134 = vector.broadcast %cst_52 : f32 to vector<1x16xf32>
    %135 = vector.broadcast %cst_53 : f32 to vector<1x16xf32>
    %136 = arith.select %122, %134, %135 : vector<1x16xi1>, vector<1x16xf32>
    %cst_54 = arith.constant 1.57079637 : f32
    %137 = vector.broadcast %cst_54 : f32 to vector<1x16xf32>
    %138 = arith.select %118, %137, %136 : vector<1x16xi1>, vector<1x16xf32>
    %139 = arith.mulf %133, %133 : vector<1x16xf32>
    %cst_55 = arith.constant 0.0805374458 : f32
    %140 = vector.broadcast %cst_55 : f32 to vector<1x16xf32>
    %141 = arith.mulf %140, %139 : vector<1x16xf32>
    %cst_56 = arith.constant 0.138776854 : f32
    %142 = vector.broadcast %cst_56 : f32 to vector<1x16xf32>
    %143 = arith.subf %141, %142 : vector<1x16xf32>
    %144 = arith.mulf %143, %139 : vector<1x16xf32>
    %cst_57 = arith.constant 0.199777111 : f32
    %145 = vector.broadcast %cst_57 : f32 to vector<1x16xf32>
    %146 = arith.addf %144, %145 : vector<1x16xf32>
    %147 = arith.mulf %146, %139 : vector<1x16xf32>
    %cst_58 = arith.constant 0.333329499 : f32
    %148 = vector.broadcast %cst_58 : f32 to vector<1x16xf32>
    %149 = arith.subf %147, %148 : vector<1x16xf32>
    %150 = arith.mulf %149, %139 : vector<1x16xf32>
    %151 = arith.mulf %150, %133 : vector<1x16xf32>
    %152 = arith.addf %151, %133 : vector<1x16xf32>
    %153 = arith.addf %138, %152 : vector<1x16xf32>
    %154 = arith.mulf %115, %153 : vector<1x16xf32>
    %155 = vector.extract_strided_slice %0 {offsets = [6, 0], sizes = [1, 16], strides = [1, 1]} : vector<8x16xf32> to vector<1x16xf32>
    %156 = vector.extract_strided_slice %0 {offsets = [7, 0], sizes = [1, 16], strides = [1, 1]} : vector<8x16xf32> to vector<1x16xf32>
    %cst_59 = arith.constant 1.000000e-07 : f32
    %157 = vector.broadcast %cst_59 : f32 to vector<1x16xf32>
    %158 = arith.addf %156, %157 : vector<1x16xf32>
    %159 = arith.divf %155, %158 : vector<1x16xf32>
    %cst_60 = arith.constant 0.000000e+00 : f32
    %160 = vector.broadcast %cst_60 : f32 to vector<1x16xf32>
    %161 = arith.cmpf olt, %159, %160 : vector<1x16xf32>
    %cst_61 = arith.constant -1.000000e+00 : f32
    %cst_62 = arith.constant 1.000000e+00 : f32
    %162 = vector.broadcast %cst_61 : f32 to vector<1x16xf32>
    %163 = vector.broadcast %cst_62 : f32 to vector<1x16xf32>
    %164 = arith.select %161, %162, %163 : vector<1x16xi1>, vector<1x16xf32>
    %165 = math.absf %159 : vector<1x16xf32>
    %cst_63 = arith.constant 2.41421366 : f32
    %166 = vector.broadcast %cst_63 : f32 to vector<1x16xf32>
    %167 = arith.cmpf ogt, %165, %166 : vector<1x16xf32>
    %cst_64 = arith.constant dense<true> : vector<1x16xi1>
    %168 = arith.xori %167, %cst_64 : vector<1x16xi1>
    %cst_65 = arith.constant 0.414213568 : f32
    %169 = vector.broadcast %cst_65 : f32 to vector<1x16xf32>
    %170 = arith.cmpf ogt, %165, %169 : vector<1x16xf32>
    %171 = arith.andi %168, %170 : vector<1x16xi1>
    %cst_66 = arith.constant 1.000000e-30 : f32
    %172 = vector.broadcast %cst_66 : f32 to vector<1x16xf32>
    %173 = arith.addf %165, %172 : vector<1x16xf32>
    %cst_67 = arith.constant -1.000000e+00 : f32
    %174 = vector.broadcast %cst_67 : f32 to vector<1x16xf32>
    %175 = arith.divf %174, %173 : vector<1x16xf32>
    %cst_68 = arith.constant 1.000000e+00 : f32
    %176 = vector.broadcast %cst_68 : f32 to vector<1x16xf32>
    %177 = arith.subf %165, %176 : vector<1x16xf32>
    %cst_69 = arith.constant 1.000000e+00 : f32
    %178 = vector.broadcast %cst_69 : f32 to vector<1x16xf32>
    %179 = arith.addf %165, %178 : vector<1x16xf32>
    %180 = arith.divf %177, %179 : vector<1x16xf32>
    %181 = arith.select %171, %180, %165 : vector<1x16xi1>, vector<1x16xf32>
    %182 = arith.select %167, %175, %181 : vector<1x16xi1>, vector<1x16xf32>
    %cst_70 = arith.constant 0.785398185 : f32
    %cst_71 = arith.constant 0.000000e+00 : f32
    %183 = vector.broadcast %cst_70 : f32 to vector<1x16xf32>
    %184 = vector.broadcast %cst_71 : f32 to vector<1x16xf32>
    %185 = arith.select %171, %183, %184 : vector<1x16xi1>, vector<1x16xf32>
    %cst_72 = arith.constant 1.57079637 : f32
    %186 = vector.broadcast %cst_72 : f32 to vector<1x16xf32>
    %187 = arith.select %167, %186, %185 : vector<1x16xi1>, vector<1x16xf32>
    %188 = arith.mulf %182, %182 : vector<1x16xf32>
    %cst_73 = arith.constant 0.0805374458 : f32
    %189 = vector.broadcast %cst_73 : f32 to vector<1x16xf32>
    %190 = arith.mulf %189, %188 : vector<1x16xf32>
    %cst_74 = arith.constant 0.138776854 : f32
    %191 = vector.broadcast %cst_74 : f32 to vector<1x16xf32>
    %192 = arith.subf %190, %191 : vector<1x16xf32>
    %193 = arith.mulf %192, %188 : vector<1x16xf32>
    %cst_75 = arith.constant 0.199777111 : f32
    %194 = vector.broadcast %cst_75 : f32 to vector<1x16xf32>
    %195 = arith.addf %193, %194 : vector<1x16xf32>
    %196 = arith.mulf %195, %188 : vector<1x16xf32>
    %cst_76 = arith.constant 0.333329499 : f32
    %197 = vector.broadcast %cst_76 : f32 to vector<1x16xf32>
    %198 = arith.subf %196, %197 : vector<1x16xf32>
    %199 = arith.mulf %198, %188 : vector<1x16xf32>
    %200 = arith.mulf %199, %182 : vector<1x16xf32>
    %201 = arith.addf %200, %182 : vector<1x16xf32>
    %202 = arith.addf %187, %201 : vector<1x16xf32>
    %203 = arith.mulf %164, %202 : vector<1x16xf32>
    %cst_77 = arith.constant 0.000000e+00 : f32
    %204 = vector.broadcast %cst_77 : f32 to vector<1x16xf32>
    %205 = arith.cmpf oge, %156, %204 : vector<1x16xf32>
    %cst_78 = arith.constant 1.57079625 : f32
    %206 = vector.broadcast %cst_78 : f32 to vector<1x16xf32>
    %207 = arith.subf %203, %206 : vector<1x16xf32>
    %cst_79 = arith.constant 1.57079625 : f32
    %208 = vector.broadcast %cst_79 : f32 to vector<1x16xf32>
    %209 = arith.addf %203, %208 : vector<1x16xf32>
    %210 = arith.select %205, %207, %209 : vector<1x16xi1>, vector<1x16xf32>
    %211 = arith.addf %210, %154 : vector<1x16xf32>
    %cst_80 = arith.constant 3.1415925 : f32
    %212 = vector.broadcast %cst_80 : f32 to vector<1x16xf32>
    %213 = arith.cmpf ogt, %211, %212 : vector<1x16xf32>
    %cst_81 = arith.constant 6.283185 : f32
    %214 = vector.broadcast %cst_81 : f32 to vector<1x16xf32>
    %215 = arith.subf %211, %214 : vector<1x16xf32>
    %216 = arith.select %213, %215, %211 : vector<1x16xi1>, vector<1x16xf32>
    %cst_82 = arith.constant -3.1415925 : f32
    %217 = vector.broadcast %cst_82 : f32 to vector<1x16xf32>
    %218 = arith.cmpf olt, %216, %217 : vector<1x16xf32>
    %cst_83 = arith.constant 6.283185 : f32
    %219 = vector.broadcast %cst_83 : f32 to vector<1x16xf32>
    %220 = arith.addf %216, %219 : vector<1x16xf32>
    %221 = arith.select %218, %220, %216 : vector<1x16xi1>, vector<1x16xf32>
    %222 = arith.mulf %3, %221 : vector<1x16xf32>
    %cst_84 = arith.constant 0.000000e+00 : f32
    %223 = vector.broadcast %cst_84 : f32 to vector<1x16xf32>
    %224 = arith.cmpf ogt, %222, %223 : vector<1x16xf32>
    %cst_85 = arith.constant 3.1415925 : f32
    %225 = vector.broadcast %cst_85 : f32 to vector<1x16xf32>
    %226 = arith.subf %222, %225 : vector<1x16xf32>
    %cst_86 = arith.constant 0.000000e+00 : f32
    %227 = vector.broadcast %cst_86 : f32 to vector<1x16xf32>
    %228 = arith.cmpf olt, %222, %227 : vector<1x16xf32>
    %cst_87 = arith.constant 3.1415925 : f32
    %229 = vector.broadcast %cst_87 : f32 to vector<1x16xf32>
    %230 = arith.addf %222, %229 : vector<1x16xf32>
    %231 = arith.select %228, %230, %222 : vector<1x16xi1>, vector<1x16xf32>
    %232 = arith.select %224, %226, %231 : vector<1x16xi1>, vector<1x16xf32>
    %233 = arith.mulf %3, %232 : vector<1x16xf32>
    %cst_88 = arith.constant 1.000000e+00 : f32
    %234 = vector.broadcast %cst_88 : f32 to vector<1x16xf32>
    %235 = arith.subf %234, %3 : vector<1x16xf32>
    %236 = arith.mulf %235, %221 : vector<1x16xf32>
    %237 = arith.addf %233, %236 : vector<1x16xf32>
    %238 = arith.mulf %2, %237 : vector<1x16xf32>
    %239 = arith.mulf %2, %5 : vector<1x16xf32>
    %240 = math.cos %238 : vector<1x16xf32>
    %241 = math.sin %238 : vector<1x16xf32>
    %242 = math.cos %239 : vector<1x16xf32>
    %243 = math.sin %239 : vector<1x16xf32>
    %244 = arith.subf %240, %242 : vector<1x16xf32>
    %245 = arith.subf %241, %243 : vector<1x16xf32>
    %cst_89 = arith.constant 5.000000e-01 : f32
    %246 = vector.broadcast %cst_89 : f32 to vector<1x16xf32>
    %247 = arith.mulf %246, %101 : vector<1x16xf32>
    %cst_90 = arith.constant 5.000000e-01 : f32
    %248 = vector.broadcast %cst_90 : f32 to vector<1x16xf32>
    %249 = arith.mulf %248, %97 : vector<1x16xf32>
    %250 = arith.subf %92, %101 : vector<1x16xf32>
    %cst_91 = arith.constant 5.000000e-01 : f32
    %251 = vector.broadcast %cst_91 : f32 to vector<1x16xf32>
    %252 = arith.mulf %251, %250 : vector<1x16xf32>
    %253 = arith.subf %88, %97 : vector<1x16xf32>
    %cst_92 = arith.constant 5.000000e-01 : f32
    %254 = vector.broadcast %cst_92 : f32 to vector<1x16xf32>
    %255 = arith.mulf %254, %253 : vector<1x16xf32>
    %256 = arith.subf %54, %73 : vector<1x16xf32>
    %257 = math.absf %256 : vector<1x16xf32>
    %258 = arith.subf %104, %107 : vector<1x16xf32>
    %259 = math.absf %258 : vector<1x16xf32>
    %260 = arith.addf %257, %259 : vector<1x16xf32>
    %261 = arith.subf %64, %83 : vector<1x16xf32>
    %262 = math.absf %261 : vector<1x16xf32>
    %263 = arith.addf %260, %262 : vector<1x16xf32>
    %cst_93 = arith.constant 8.000000e+00 : f32
    %264 = vector.broadcast %cst_93 : f32 to vector<1x16xf32>
    %265 = arith.mulf %264, %263 : vector<1x16xf32>
    %266 = arith.mulf %244, %247 : vector<1x16xf32>
    %267 = arith.mulf %245, %249 : vector<1x16xf32>
    %268 = arith.mulf %244, %249 : vector<1x16xf32>
    %269 = arith.mulf %245, %247 : vector<1x16xf32>
    %270 = arith.addf %266, %267 : vector<1x16xf32>
    %271 = math.absf %270 : vector<1x16xf32>
    %272 = arith.subf %266, %267 : vector<1x16xf32>
    %273 = math.absf %272 : vector<1x16xf32>
    %274 = arith.addf %271, %273 : vector<1x16xf32>
    %275 = arith.subf %268, %269 : vector<1x16xf32>
    %276 = math.absf %275 : vector<1x16xf32>
    %277 = arith.addf %274, %276 : vector<1x16xf32>
    %278 = arith.addf %268, %269 : vector<1x16xf32>
    %279 = math.absf %278 : vector<1x16xf32>
    %280 = arith.addf %277, %279 : vector<1x16xf32>
    %cst_94 = arith.constant 4.000000e+00 : f32
    %281 = vector.broadcast %cst_94 : f32 to vector<1x16xf32>
    %282 = arith.mulf %281, %280 : vector<1x16xf32>
    %283 = arith.mulf %242, %252 : vector<1x16xf32>
    %284 = arith.mulf %243, %255 : vector<1x16xf32>
    %285 = arith.mulf %242, %255 : vector<1x16xf32>
    %286 = arith.mulf %243, %252 : vector<1x16xf32>
    %287 = arith.addf %283, %284 : vector<1x16xf32>
    %288 = math.absf %287 : vector<1x16xf32>
    %289 = arith.subf %283, %284 : vector<1x16xf32>
    %290 = math.absf %289 : vector<1x16xf32>
    %291 = arith.addf %288, %290 : vector<1x16xf32>
    %292 = arith.subf %285, %286 : vector<1x16xf32>
    %293 = math.absf %292 : vector<1x16xf32>
    %294 = arith.addf %291, %293 : vector<1x16xf32>
    %295 = arith.addf %285, %286 : vector<1x16xf32>
    %296 = math.absf %295 : vector<1x16xf32>
    %297 = arith.addf %294, %296 : vector<1x16xf32>
    %298 = arith.subf %90, %99 : vector<1x16xf32>
    %299 = math.absf %298 : vector<1x16xf32>
    %300 = arith.addf %297, %299 : vector<1x16xf32>
    %cst_95 = arith.constant 4.000000e+00 : f32
    %301 = vector.broadcast %cst_95 : f32 to vector<1x16xf32>
    %302 = arith.mulf %301, %300 : vector<1x16xf32>
    %303 = vector.shape_cast %265 : vector<1x16xf32> to vector<1x1x16xf32>
    %cst_96 = arith.constant dense<0.000000e+00> : vector<1xf32>
    %304 = vector.multi_reduction <add>, %303, %cst_96 [1, 2] : vector<1x1x16xf32> to vector<1xf32>
    %305 = vector.shape_cast %304 : vector<1xf32> to vector<1x1x1xf32>
    %306 = vector.extract %305[0, 0, 0] : f32 from vector<1x1x1xf32>
    %307 = vector.shape_cast %282 : vector<1x16xf32> to vector<1x1x16xf32>
    %cst_97 = arith.constant dense<0.000000e+00> : vector<1xf32>
    %308 = vector.multi_reduction <add>, %307, %cst_97 [1, 2] : vector<1x1x16xf32> to vector<1xf32>
    %309 = vector.shape_cast %308 : vector<1xf32> to vector<1x1x1xf32>
    %310 = vector.extract %309[0, 0, 0] : f32 from vector<1x1x1xf32>
    %311 = arith.addf %306, %310 : f32
    %312 = vector.shape_cast %302 : vector<1x16xf32> to vector<1x1x16xf32>
    %cst_98 = arith.constant dense<0.000000e+00> : vector<1xf32>
    %313 = vector.multi_reduction <add>, %312, %cst_98 [1, 2] : vector<1x1x16xf32> to vector<1xf32>
    %314 = vector.shape_cast %313 : vector<1xf32> to vector<1x1x1xf32>
    %315 = vector.extract %314[0, 0, 0] : f32 from vector<1x1x1xf32>
    %316 = arith.addf %311, %315 : f32
    %cst_99 = arith.constant 1.250000e-02 : f32
    %317 = arith.mulf %316, %cst_99 : f32
    %318 = vector.broadcast %317 : f32 to vector<1x1xf32>
    %c0_100 = arith.constant 0 : index
    %c0_101 = arith.constant 0 : index
    %319 = vector.load %arg8[%c0_100, %c0_101] : memref<1x1xf32, #tpu.memory_space<vmem>>, vector<1x1xf32>
    tpu.vector_store %arg8[%c0_100, %c0_101], %318 {strides = array<i32>} : memref<1x1xf32, #tpu.memory_space<vmem>>, vector<1x1xf32>,
    return
  }
}

</mosaic_0001>

<bundles_post_ra>
// kernel: reg3d_loss.1
= control target key start
LH: loop header
LB: loop body
LE: loop exit
PB: predicated region body
PF: predicated region fallthrough
CT: control target
= control target key end

     0   :  { %v967_v4 = vmov 1.78   ;;  %v968_v13 = vmov 1.7   ;;  %v106_v16 = vlaneseq  ;;  %s1348_s0 = inlined_call_operand.vmem [shape: f32[8,16], index: 0, kind: input, shape index: {}]   ;;  %s1349_s1 = inlined_call_operand.vmem [shape: f32[8,16], index: 1, kind: input, shape index: {}]   ;;  %s1350_s2 = inlined_call_operand.vmem [shape: f32[2,16], index: 2, kind: input, shape index: {}]   ;;  %s1351_s3 = inlined_call_operand.vmem [shape: f32[1,16], index: 3, kind: input, shape index: {}]   ;;  %s1352_s4 = inlined_call_operand.vmem [shape: f32[1,16], index: 4, kind: input, shape index: {}]   ;;  %s1353_s5 = inlined_call_operand.vmem [shape: f32[1,16], index: 5, kind: input, shape index: {}]   ;;  %s1354_s6 = inlined_call_operand.vmem [shape: f32[1,16], index: 6, kind: input, shape index: {}]   ;;  %s1355_s7 = inlined_call_operand.vmem [shape: f32[9,16], index: 7, kind: input, shape index: {}]   ;;  %s1356_s8 = inlined_call_operand.hbm [shape: f32[1,1], index: 8, kind: output, shape index: {}]  }
   0x1   :  { %v1029_v0 = vld [vmem:[%s1353_s5] sm:$0x1]  ;;  %v37_v6 = vld [vmem:[%s1350_s2 + $0x1] sm:$0x1]  ;;  %v41_v18 = vld [vmem:[%s1355_s7 + $0x3] sm:$0x1] }
   0x2   :  { %vm47_vm0 = vcmp.eq.f32.partialorder %v1029_v0, 0.0  ;;  %vm48_vm1 = vcmp.eq.f32.partialorder %v1029_v0, 1.0  ;;  %v1036_v1 = vld [vmem:[%s1348_s0] sm:$0xff] }
   0x3   :  { %v31_v2 = vld [vmem:[%s1349_s1] sm:$0xff]  ;;  %v53_v5 = vsel %vm48_vm1, 0.88, %v967_v4  ;;  %v60_v8 = vrot.slane %v1036_v1, 1  ;;  %v63_v9 = vrot.slane %v1036_v1, 2 }
   0x4   :  { %v36_v3 = vld [vmem:[%s1350_s2] sm:$0x1]  ;;  %v1051_v7 = vsel %vm47_vm0, 3.88, %v53_v5  ;;  %v82_v10 = vrot.slane %v31_v2, 1  ;;  %v85_v11 = vrot.slane %v31_v2, 2 }
   0x5   :  { %v103_v12 = vmul.f32 1.442695, %v1036_v1  ;;  %v49_v14 = vsel %vm48_vm1, 1.73, %v968_v13  ;;  %v62_v15 = vadd.f32 %v60_v8, %v36_v3  ;;  %v38_v17 = vld [vmem:[%s1355_s7] sm:$0x1]  ;;  %v65_v21 = vadd.f32 %v63_v9, %v37_v6 }
   0x6   :  { %v42_v19 = vld [vmem:[%s1355_s7 + $0x4] sm:$0x1]  ;;  %v44_v20 = vld [vmem:[%s1355_s7 + $0x6] sm:$0x1]  ;;  %v84_v22 = vadd.f32 %v82_v10, %v36_v3  ;;  %v87_v23 = vadd.f32 %v85_v11, %v37_v6  ;;  %v45_v24 = vld [vmem:[%s1355_s7 + $0x7] sm:$0x1] }
   0x7   :  { %919 = vpow2.f32 %v103_v12  ;;  %v57_v25 = vmul.f32 16.32, %v31_v2 }
   0x8   :  { %13 = vsyncpa [#allocation3], 0  ;;  %v39_v26 = vld [vmem:[%s1355_s7 + $0x1] sm:$0x1]  ;;  %v55_v27 = vmul.f32 16.32, %v1036_v1  ;;  %v66_v30 = vmul.f32 %v62_v15, %v38_v17  ;;  %v71_v33 = vmul.f32 %v62_v15, %v41_v18  ;;  %v72_v34 = vmul.f32 %v65_v21, %v42_v19 }
   0x9   :  { %v126_v28 = vmul.f32 1.442695, %v31_v2  ;;  %v50_v29 = vsel %vm47_vm0, 1.63, %v49_v14  ;;  %v67_v31 = vmul.f32 %v65_v21, %v39_v26  ;;  %v1079_v32 = vshrl.u32 %v106_v16, 7  ;;  %s980_s13 = smov [#allocation2]  }
   0xa   :  { %v98_v35 = vmul.f32 %v84_v22, %v44_v20  ;;  %v99_v36 = vmul.f32 %v87_v23, %v45_v24  ;;  %v46_v37 = vld [vmem:[%s1355_s7 + $0x8] sm:$0x1]  ;;  %v58_v38 = vadd.f32 28.01, %v57_v25  ;;  %v76_v39 = vmul.f32 %v62_v15, %v44_v20  ;;  %v43_v51 = vld [vmem:[%s1355_s7 + $0x5] sm:$0x1] }
   0xb   :  { %v77_v40 = vmul.f32 %v65_v21, %v45_v24  ;;  %v108_v41 = vsub.s32 0, %v1079_v32  ;;  %v88_v42 = vmul.f32 %v84_v22, %v38_v17  ;;  %v89_v43 = vmul.f32 %v87_v23, %v39_v26  ;;  %v40_v58 = vld [vmem:[%s1355_s7 + $0x2] sm:$0x1]  ;;  %v1097_v2 = vld [vmem:[%s1351_s3] sm:$0x1]  ;;  %s858_s0 = sshll.u32 %s980_s13, 4  ;;  %s859_s0 = int_to_ptr.vmem [resolvable:$true] %s858_s0 }
   0xc   :  { %v100_v44 = vadd.f32 %v99_v36, %v98_v35  ;;  %921 = vpow2.f32 %v126_v28  ;;  %v93_v45 = vmul.f32 %v84_v22, %v41_v18  ;;  %v94_v46 = vmul.f32 %v87_v23, %v42_v19  ;;  %v35_v3 = vld [vmem:[%s1354_s6] sm:$0x1]  ;;  %s943_s2 = scalar_lea.vmem %s859_s0, 16  ;;  %s947_s14 = scalar_lea.vmem %s859_s0, 32 }
   0xd   :  { %v109_v47 = vrot.slane %v50_v29, %v108_v41  ;;  %v68_v48 = vadd.f32 %v67_v31, %v66_v30  ;;  %v73_v49 = vadd.f32 %v72_v34, %v71_v33  ;;  %v174_v52 = vadd.f32 1e-07, %v1036_v1  ;;  %p944_p0 = scmp.ne.s32.totalorder %s859_s0, %s943_s2  ;;  %p948_p1 = scmp.lt.s32.totalorder %s859_s0, %s859_s0 }
   0xe   :  { %v101_v50 = vadd.f32 %v100_v44, %v46_v37  ;;  %v56_v54 = vadd.f32 28.01, %v55_v27  ;;  %v78_v55 = vadd.f32 %v77_v40, %v76_v39  ;;  %v90_v56 = vadd.f32 %v89_v43, %v88_v42  ;;  %p949_p2 = scmp.lt.s32.totalorder %s947_s14, %s943_s2 }
   0xf   :  { %v95_v59 = vadd.f32 %v94_v46, %v93_v45  ;;  %v176_v61 = vrot.slane %v174_v52, 1  ;;  %v69_v62 = vadd.f32 %v68_v48, %v40_v58  ;;  %v74_v63 = vadd.f32 %v73_v49, %v43_v51 }
  0x10   :  { %v102_v57 = vmul.f32 %v101_v50, %v58_v38  ;;  %v969_v4 = vmov 0.58   ;;  %v79_v9 = vadd.f32 %v78_v55, %v46_v37  ;;  %v91_v10 = vadd.f32 %v90_v56, %v40_v58  ;;  %p950_p3 = por %p949_p2, %p948_p1 }
  0x11   :  { %v920_v53 = vpop.eup %919  ;;  %v51_v5 = vsel %vm48_vm1, 0.67, %v969_v4  ;;  %v123_v12 = vrot.slane %v1051_v7, %v108_v41  ;;  %v96_v13 = vadd.f32 %v95_v59, %v43_v51  ;;  %v1109_v14 = vmul.f32 %v35_v3, %v1097_v2 }
  0x12   :  { %v1092_v60 = vmul.f32 %v920_v53, %v109_v47  ;;  %923 = vrcp.f32 %v102_v57  ;;  %v52_v8 = vsel %vm47_vm0, 1.53, %v51_v5  ;;  %v70_v16 = vmul.f32 %v69_v62, %v56_v54  ;;  %p951_p4 = pnand %p950_p3, %p944_p0 }
  0x13   :  { %925 = vrcp.f32 %v176_v61  ;;  %v116_v11 = vrot.slane %v52_v8, %v108_v41  ;;  %v75_v17 = vmul.f32 %v74_v63, %v56_v54  ;;  %v1113_v19 = vmul.f32 %v920_v53, %v123_v12 }
  0x14   :  { %v131_v6 = vmul.f32 0.5, %v1092_v60  ;;  %v80_v23 = vmul.f32 %v79_v9, %v56_v54  ;;  %v92_v7 = vmul.f32 %v91_v10, %v58_v38  ;;  %v97_v24 = vmul.f32 %v96_v13, %v58_v38 }
  0x15   :  { %v1111_v18 = vmul.f32 %v920_v53, %v116_v11  ;;  %v472_v27 = vand.u32 2139095040, %v1109_v14  ;;  %v469_v37 = vand.u32 2147483647, %v1109_v14  ;;  %vm815_vm2 = vcmask 122880  }
  0x16   :  { %v922_v15 = vpop.eup %921  ;;  %v133_v0 = vrot.slane %v131_v6, 3  ;;  %v683_v33 = vsub.f32 %v70_v16, %v92_v7  ;;  %v688_v36 = vsub.f32 %v80_v23, %v102_v57  ;;  %v970_v6 = vmov 683565275  }
  0x17   :  { %v1115_v20 = vmul.f32 %v922_v15, %v109_v47  ;;  %v1117_v21 = vmul.f32 %v922_v15, %v116_v11  ;;  %v1119_v22 = vmul.f32 %v922_v15, %v123_v12  ;;  %v473_v34 = vshrl.u32 %v472_v27, 23 }
  0x18   :  { %v135_v30 = vadd.f32 %v133_v0, %v75_v17  ;;  %v684_v44 = vand.u32 2147483647, %v683_v33  ;;  %v689_v47 = vand.u32 2147483647, %v688_v36  ;;  %v476_v48 = vand.u32 8388607, %v469_v37 }
  0x19   :  { %v1122_v25 = vmul.f32 0.5, %v1115_v20  ;;  %v681_v26 = vsub.f32 %v1092_v60, %v1115_v20  ;;  %v679_v28 = vsub.f32 %v1113_v19, %v1119_v22  ;;  %v794_v29 = vsub.f32 %v1111_v18, %v1117_v21  ;;  %v33_v60 = vld [vmem:[%s1352_s4] sm:$0x1] }
  0x1a   :  { %v883_v41 = vadd.s32 4294967169, %v473_v34  ;;  %v477_v57 = vor.u32 8388608, %v476_v48  ;;  %v971_v9 = vmov 2475754826   ;;  %v972_v11 = vmov 2131351028  }
  0x1b   :  { %v138_v31 = vrot.slane %v1122_v25, 3  ;;  %v973_v15 = vmov 2102212464   ;;  %v974_v17 = vmov 920167782   ;;  %vm975_vm8 = vmmov 1  }
  0x1c   :  { %v924_v35 = vpop.eup %923  ;;  %v479_v51 = vadd.s32 1, %v883_v41  ;;  %v1151_v63 = vshll.u32 %v477_v57, 8  ;;  %v976_v34 = vmov 1326507024  }
  0x1d   :  { %v926_v38 = vpop.eup %925  ;;  %v140_v39 = vadd.f32 %v138_v31, %v97_v24  ;;  %v142_v40 = vmul.f32 %v924_v35, %v92_v7 }
  0x1e   :  { %v1134_v42 = vmul.f32 %v926_v38, %v1036_v1  ;;  %vm480_vm3 = vcmp.gt.s32.totalorder %v479_v51, 0 }
  0x1f   :  { %v1136_v43 = vadd.f32 1e-07, %v142_v40  ;;  %v685_v45 = vsub.f32 %v135_v30, %v140_v39  ;;  %v481_v59 = vsel %vm480_vm3, %v479_v51, 0 }
  0x20   :  { %v1139_v46 = vand.u32 2147483647, %v1134_v42  ;;  %v483_v62 = vand.u32 31, %v481_v59  ;;  %v482_v4 = vshrl.u32 %v481_v59, 5 }
  0x21   :  { %v1144_v49 = vand.u32 2147483647, %v1136_v43  ;;  %v686_v50 = vand.u32 2147483647, %v685_v45  ;;  %vm144_vm3 = vcmp.lt.f32.partialorder %v1136_v43, 0.0 }
  0x22   :  { %v187_v55 = vadd.f32 1e-30, %v1139_v46  ;;  %v191_v56 = vadd.f32 1.0, %v1139_v46  ;;  %vm183_vm4 = vcmp.gt.f32.partialorder %v1139_v46, 2.4142137  ;;  %v484_v5 = vsub.s32 32, %v483_v62 }
  0x23   :  { %v151_v52 = vadd.f32 1e-30, %v1144_v49  ;;  %v687_v53 = vadd.f32 %v686_v50, %v684_v44  ;;  %v155_v54 = vadd.f32 1.0, %v1144_v49  ;;  %vm147_vm5 = vcmp.gt.f32.partialorder %v1144_v49, 2.4142137  ;;  %vm1178_vm12 = vmxor %vm183_vm4, %vm975_vm8 }
  0x24   :  { %vm185_vm6 = vcmp.gt.f32.partialorder %v1139_v46, 0.41421357  ;;  %v486_v8 = vshll.u32 %v970_v6, %v483_v62  ;;  %v489_v10 = vshll.u32 %v971_v9, %v483_v62  ;;  %v492_v12 = vshll.u32 %v972_v11, %v483_v62  ;;  %vm1169_vm9 = vmxor %vm147_vm5, %vm975_vm8 }
  0x25   :  { %927 = vrcp.f32 %v151_v52  ;;  %v690_v58 = vadd.f32 %v689_v47, %v687_v53  ;;  %vm149_vm7 = vcmp.gt.f32.partialorder %v1144_v49, 0.41421357  ;;  %v869_v13 = vadd.f32 -1.0, %v1139_v46  ;;  %vm1200_vm0 = vmand %vm1178_vm12, %vm185_vm6 }
  0x26   :  { %929 = vrcp.f32 %v155_v54  ;;  %v495_v16 = vshll.u32 %v973_v15, %v483_v62  ;;  %v498_v0 = vshll.u32 %v974_v17, %v483_v62  ;;  %v485_v23 = vshrl.u32 %v970_v6, %v484_v5  ;;  %vm1186_vm15 = vmand %vm1169_vm9, %vm149_vm7 }
  0x27   :  { %931 = vrcp.f32 %v187_v55  ;;  %v691_v61 = vmul.f32 8.0, %v690_v58  ;;  %v487_v7 = vshrl.u32 %v971_v9, %v484_v5  ;;  %v490_v24 = vshrl.u32 %v972_v11, %v484_v5 }
  0x28   :  { %933 = vrcp.f32 %v191_v56  ;;  %v493_v27 = vshrl.u32 %v973_v15, %v484_v5  ;;  %v866_v31 = vadd.f32 -1.0, %v1144_v49  ;;  %v496_v33 = vshrl.u32 %v974_v17, %v484_v5 }
  0x29   :  { %v816_v3 = vsel %vm815_vm2, %v691_v61, 0.0  ;;  %v499_v35 = vshrl.u32 %v976_v34, %v484_v5  ;;  %vm501_vm10 = vcmp.lt.s32.totalorder %v482_v4, 1  ;;  %v488_v36 = vor.u32 %v487_v7, %v486_v8 }
  0x2a   :  { %817 = vadd.xlane.f32.xlu0 %v816_v3  ;;  %v491_v38 = vor.u32 %v490_v24, %v489_v10  ;;  %v494_v39 = vor.u32 %v493_v27, %v492_v12  ;;  %vm504_vm11 = vcmp.lt.s32.totalorder %v482_v4, 4  ;;  %v497_v44 = vor.u32 %v496_v33, %v495_v16 }
  0x2b   :  { %v500_v45 = vor.u32 %v499_v35, %v498_v0  ;;  %vm502_vm13 = vcmp.lt.s32.totalorder %v482_v4, 2  ;;  %vm503_vm14 = vcmp.lt.s32.totalorder %v482_v4, 3  ;;  %v505_v51 = vsel %vm501_vm10, %v485_v23, %v488_v36 }
  0x2c   :  { %v506_v52 = vsel %vm504_vm11, %v494_v39, 2102212464  ;;  %v509_v53 = vsel %vm501_vm10, %v488_v36, %v491_v38  ;;  %v510_v57 = vsel %vm504_vm11, %v497_v44, 920167782  ;;  %v513_v58 = vsel %vm501_vm10, %v491_v38, %v494_v39 }
  0x2d   :  { %v507_v56 = vsel %vm503_vm14, %v491_v38, %v506_v52  ;;  %v511_v5 = vsel %vm503_vm14, %v494_v39, %v510_v57  ;;  %v514_v8 = vsel %vm504_vm11, %v500_v45, 1326507024  ;;  %vm180_vm6 = vcmp.lt.f32.partialorder %v1134_v42, 0.0 }
  0x2e   :  { %v508_v3 = vsel %vm502_vm13, %v505_v51, %v507_v56  ;;  %v512_v16 = vsel %vm502_vm13, %v509_v53, %v511_v5  ;;  %v515_v0 = vsel %vm503_vm14, %v497_v44, %v514_v8  ;;  %vm471_vm9 = vcmp.lt.s32.totalorder %v1109_v14, 0 }
  0x2f   :  { %v928_v40 = vpop.eup %927  ;;  %v516_v7 = vsel %vm502_vm13, %v513_v58, %v515_v0  ;;  %v1216_v24 = vmul.u32.u64.low %v1151_v63, %v512_v16  ;;  %v1217_v27 = vmul.u32.u64.high %v1151_v63, %v512_v16, %v1216_v24  ;;  %v524_v4 = vmul.u32 %v1151_v63, %v508_v3 }
  0x30   :  { %v930_v47 = vpop.eup %929  ;;  %v153_v50 = vmul.f32 -1.0, %v928_v40  ;;  %vm470_vm10 = vcmp.le.f32.partialorder %v469_v37, 0.7853982  ;;  %vm561_vm13 = vweird.f32 %v1109_v14 }
  0x31   :  { %v932_v54 = vpop.eup %931  ;;  %v157_v55 = vmul.f32 %v930_v47, %v866_v31  ;;  %v527_v39 = vadd.s32 1, %v1217_v27 }
  0x32   :  { %v934_v59 = vpop.eup %933  ;;  %v189_v62 = vmul.f32 -1.0, %v932_v54 }
  0x33   :  { %v158_v10 = vsel %vm1186_vm15, %v157_v55, %v1144_v49  ;;  %v193_v12 = vmul.f32 %v934_v59, %v869_v13  ;;  %v1223_v13 = vmul.u32.u64.low %v1151_v63, %v516_v7  ;;  %v1224_v33 = vmul.u32.u64.high %v1151_v63, %v516_v7, %v1223_v13 }
  0x34   :  { %v159_v23 = vsel %vm147_vm5, %v153_v50, %v158_v10  ;;  %v977_v59 = vmov 0.0   ;;  %v978_v13 = vmov 1.0  }
  0x35   :  { %v162_v30 = vmul.f32 %v159_v23, %v159_v23  ;;  %v194_v31 = vsel %vm1200_vm0, %v193_v12, %v1139_v46  ;;  %vm526_vm1 = vc.u32 %v1224_v33, %v1216_v24  ;;  %v196_v12 = vsel %vm1200_vm0, 0.7853982, %v977_v59 }
  0x36   :  { %v195_v35 = vsel %vm183_vm4, %v189_v62, %v194_v31  ;;  %v528_v44 = vsel %vm526_vm1, %v527_v39, %v1217_v27  ;;  %v160_v62 = vsel %vm1186_vm15, 0.7853982, %v977_v59  ;;  %v525_v49 = vadd.s32 %v1216_v24, %v1224_v33 }
  0x37   :  { %v163_v36 = vmul.f32 0.080537446, %v162_v30  ;;  %v198_v38 = vmul.f32 %v195_v35, %v195_v35  ;;  %v529_v50 = vadd.s32 %v528_v44, %v524_v4  ;;  %v161_v7 = vsel %vm147_vm5, 1.5707964, %v160_v62 }
  0x39   :  { %v867_v40 = vadd.f32 -0.13877685, %v163_v36  ;;  %v199_v41 = vmul.f32 0.080537446, %v198_v38  ;;  %v530_v53 = vadd.s32 536870912, %v529_v50  ;;  %v145_v36 = vsel %vm144_vm3, -1.0, %v978_v13 }
  0x3b   :  { %v165_v45 = vmul.f32 %v867_v40, %v162_v30  ;;  %v870_v47 = vadd.f32 -0.13877685, %v199_v41  ;;  %v1232_v56 = vshrl.u32 %v530_v53, 30  ;;  %v979_v53 = vmov 1966171168  }
  0x3d   :  { %v166_v51 = vadd.f32 0.19977711, %v165_v45  ;;  %v201_v52 = vmul.f32 %v870_v47, %v198_v38  ;;  %v532_v58 = vshll.u32 %v1232_v56, 30 }
  0x3f   :  { %v167_v54 = vmul.f32 %v166_v51, %v162_v30  ;;  %v202_v55 = vadd.f32 0.19977711, %v201_v52  ;;  %v533_v8 = vsub.s32 %v529_v50, %v532_v58 }
  0x41   :  { %v868_v57 = vadd.f32 -0.3333295, %v167_v54  ;;  %v203_v63 = vmul.f32 %v202_v55, %v198_v38  ;;  %v535_v0 = vsub.s32 0, %v533_v8  ;;  %v233_v54 = vunpack.c.l.s4 %v979_v53 }
  0x43   :  { %v169_v3 = vmul.f32 %v868_v57, %v162_v30  ;;  %v871_v5 = vadd.f32 -0.3333295, %v203_v63  ;;  %v884_v48 = vmin.u32 %v535_v0, %v533_v8  ;;  %v197_v30 = vsel %vm183_vm4, 1.5707964, %v196_v12 }
  0x44   :  { %vm210_vm4 = vcmp.ge.f32.partialorder %v1036_v1, 0.0  ;;  %v234_v33 = vunpack.c.0.s8 %v233_v54  ;;  %v555_v1 = vsub.s32 4, %v1232_v56 }
  0x45   :  { %v170_v10 = vmul.f32 %v169_v3, %v159_v23  ;;  %v205_v16 = vmul.f32 %v871_v5, %v198_v38  ;;  %v537_v39 = vclz %v884_v48  ;;  %v181_v38 = vsel %vm180_vm6, -1.0, %v978_v13 }
  0x46   :  { %v556_v48 = vsel %vm471_vm9, %v555_v1, %v1232_v56 }
  0x47   :  { %v171_v27 = vadd.f32 %v170_v10, %v159_v23  ;;  %v206_v31 = vmul.f32 %v205_v16, %v195_v35  ;;  %v885_v41 = vadd.s32 4294967294, %v537_v39  ;;  %v1249_v16 = vsub.s32 %v234_v33, %v1079_v32 }
  0x48   :  { %v682_v32 = vmul.f32 0.5, %v681_v26 }
  0x49   :  { %v172_v4 = vadd.f32 %v171_v27, %v161_v7  ;;  %v207_v61 = vadd.f32 %v206_v31, %v195_v35  ;;  %vm886_vm5 = vcmp.lt.s32.totalorder %v885_v41, 0 }
  0x4a   :  { %v540_v23 = vsel %vm886_vm5, 0, %v885_v41  ;;  %v769_v56 = vrot.slane %v682_v32, %v1249_v16 }
  0x4b   :  { %v208_v40 = vadd.f32 %v207_v61, %v197_v30  ;;  %v173_v43 = vmul.f32 %v172_v4, %v145_v36  ;;  %v541_v47 = vsub.s32 32, %v540_v23  ;;  %v542_v50 = vshll.u32 %v533_v8, %v540_v23 }
  0x4c   :  { %v545_v51 = vsub.s32 4294967266, %v540_v23  ;;  %v680_v30 = vmul.f32 0.5, %v679_v28  ;;  %v558_v61 = vsel %vm470_vm10, 0, %v556_v48  ;;  %v770_v28 = vcombine.high %v769_v56, %v769_v56 }
  0x4d   :  { %v209_v44 = vmul.f32 %v208_v40, %v181_v38  ;;  %v221_v46 = vrot.slane %v173_v43, 1  ;;  %v543_v55 = vshrl.u32 %v525_v49, %v541_v47  ;;  %v665_v19 = vadd.s32 3, %v558_v61 }
  0x4e   :  { %v546_v57 = vadd.s32 127, %v545_v51  ;;  %v744_v37 = vcombine.high %v680_v30, %v680_v30  ;;  %v562_v40 = vand.u32 3, %v558_v61  ;;  %v795_v47 = vand.u32 2147483647, %v794_v29 }
  0x4f   :  { %v872_v42 = vadd.f32 -1.5707963, %v209_v44  ;;  %v212_v45 = vadd.f32 1.5707963, %v209_v44  ;;  %v544_v58 = vor.u32 %v543_v55, %v542_v50  ;;  %v666_v41 = vand.u32 3, %v665_v19 }
  0x50   :  { %v547_v24 = vshll.u32 %v546_v57, 23  ;;  %v751_v26 = vrot.slane %v744_v37, %v1249_v16  ;;  %v257_v44 = vsub.f32 1.0, %v33_v60  ;;  %vm567_vm14 = vcmp.eq.s32.totalorder %v562_v40, 2 }
  0x51   :  { %v214_v52 = vrot.slane %v872_v42, 7  ;;  %v217_v35 = vrot.slane %v212_v45, 7  ;;  %v551_v5 = vcvt.s32.f32 %v544_v58  ;;  %v777_v45 = vrot.slane %v770_v28, %v1249_v16 }
  0x52   :  { %v548_v3 = vor.u32 4788187, %v547_v24  ;;  %v752_v42 = vcombine.high %v751_v26, %v751_v26  ;;  %vm671_vm15 = vcmp.eq.s32.totalorder %v666_v41, 2  ;;  %vm564_vm0 = vcmp.eq.s32.totalorder %v562_v40, 0 }
  0x53   :  { %v219_v63 = vsel %vm210_vm4, %v214_v52, %v217_v35  ;;  %vm668_vm1 = vcmp.eq.s32.totalorder %v666_v41, 0  ;;  %vm563_vm3 = vcmp.lt.s32.totalorder %v562_v40, 2  ;;  %vm667_vm6 = vcmp.lt.s32.totalorder %v666_v41, 2 }
  0x54   :  { %v223_v59 = vadd.f32 %v221_v46, %v219_v63  ;;  %v549_v10 = vand.u32 2147483647, %v548_v3  ;;  %v759_v18 = vrot.slane %v752_v42, %v1249_v16  ;;  %v778_v21 = vcombine.high %v777_v45, %v777_v45 }
  0x56   :  { %vm224_vm7 = vcmp.gt.f32.partialorder %v223_v59, 3.1415925  ;;  %v873_v62 = vadd.f32 -6.283185, %v223_v59  ;;  %v552_v0 = vmul.f32 %v551_v5, %v549_v10  ;;  %v797_v5 = vcombine.high %v795_v47, %v795_v47 }
  0x58   :  { %v226_v8 = vsel %vm224_vm7, %v873_v62, %v223_v59  ;;  %v553_v31 = vxor.u32 2147483648, %v552_v0 }
  0x59   :  { %vm227_vm8 = vcmp.lt.f32.partialorder %v226_v8, -3.1415925  ;;  %v228_v12 = vadd.f32 6.283185, %v226_v8 }
  0x5a   :  { %v554_v36 = vsel %vm471_vm9, %v553_v31, %v552_v0 }
  0x5b   :  { %v229_v7 = vsel %vm227_vm8, %v228_v12, %v226_v8  ;;  %v557_v4 = vsel %vm470_vm10, %v1109_v14, %v554_v36 }
  0x5c   :  { %v231_v27 = vcombine.high %v229_v7, %v229_v7  ;;  %935 = vcosq.f32 %v557_v4 }
  0x5d   :  { %937 = vsinq.f32 %v557_v4  ;;  %v804_v4 = vrot.slane %v797_v5, %v1249_v16 }
  0x5e   :  { %v238_v13 = vrot.slane %v231_v27, %v1249_v16 }
  0x60   :  { %v239_v39 = vcombine.high %v238_v13, %v238_v13 }
  0x62   :  { %v246_v38 = vrot.slane %v239_v39, %v1249_v16 }
  0x64   :  { %v247_v20 = vcombine.high %v246_v38, %v246_v38 }
  0x66   :  { %v249_v43 = vmul.f32 %v247_v20, %v33_v60  ;;  %v936_v50 = vpop.eup %935  ;;  %v258_v51 = vmul.f32 %v257_v44, %v247_v20 }
  0x67   :  { %v938_v52 = vpop.eup %937  ;;  %v568_v35 = vxor.u32 2147483648, %v936_v50 }
  0x68   :  { %vm250_vm11 = vcmp.gt.f32.partialorder %v249_v43, 0.0  ;;  %v874_v49 = vadd.f32 -3.1415925, %v249_v43  ;;  %vm252_vm12 = vcmp.lt.f32.partialorder %v249_v43, 0.0  ;;  %v253_v23 = vadd.f32 3.1415925, %v249_v43 }
  0x69   :  { %v565_v54 = vxor.u32 2147483648, %v938_v52  ;;  %v569_v57 = vsel %vm567_vm14, %v568_v35, %v938_v52  ;;  %v673_v63 = vsel %vm671_vm15, %v568_v35, %v938_v52 }
  0x6a   :  { %v254_v46 = vsel %vm252_vm12, %v253_v23, %v249_v43 }
  0x6b   :  { %v255_v53 = vsel %vm250_vm11, %v874_v49, %v254_v46  ;;  %v566_v29 = vsel %vm564_vm0, %v936_v50, %v565_v54  ;;  %v670_v58 = vsel %vm668_vm1, %v936_v50, %v565_v54 }
  0x6c   :  { %v256_v55 = vmul.f32 %v255_v53, %v33_v60  ;;  %v570_v24 = vsel %vm563_vm3, %v566_v29, %v569_v57  ;;  %v674_v33 = vsel %vm667_vm6, %v670_v58, %v673_v63  ;;  %v811_v60 = vrot.slane %v804_v4, %v1249_v16 }
  0x6d   :  { %v1278_v62 = vsel %vm561_vm13, nan, %v570_v24  ;;  %v1282_v3 = vsel %vm561_vm13, nan, %v674_v33 }
  0x6e   :  { %v259_v59 = vadd.f32 %v258_v51, %v256_v55  ;;  %v761_v10 = vmul.f32 %v759_v18, %v1278_v62  ;;  %v780_v1 = vmul.f32 %v778_v21, %v1282_v3  ;;  %v781_v12 = vmul.f32 %v778_v21, %v1278_v62 }
  0x6f   :  { %v782_v0 = vmul.f32 %v759_v18, %v1282_v3 }
  0x70   :  { %v1285_v8 = vmul.f32 %v259_v59, %v1097_v2  ;;  %v783_v31 = vadd.f32 %v780_v1, %v761_v10  ;;  %v785_v14 = vsub.f32 %v761_v10, %v780_v1 }
  0x71   :  { %v788_v48 = vsub.f32 %v781_v12, %v782_v0  ;;  %v791_v30 = vadd.f32 %v782_v0, %v781_v12 }
  0x72   :  { %v262_v7 = vand.u32 2147483647, %v1285_v8  ;;  %v265_v27 = vand.u32 2139095040, %v1285_v8  ;;  %v784_v13 = vand.u32 2147483647, %v783_v31  ;;  %vm264_vm12 = vcmp.lt.s32.totalorder %v1285_v8, 0 }
  0x73   :  { %v786_v2 = vand.u32 2147483647, %v785_v14  ;;  %v789_v36 = vand.u32 2147483647, %v788_v48  ;;  %v792_v37 = vand.u32 2147483647, %v791_v30 }
  0x74   :  { %v266_v32 = vshrl.u32 %v265_v27, 23  ;;  %v269_v56 = vand.u32 8388607, %v262_v7  ;;  %vm263_vm13 = vcmp.le.f32.partialorder %v262_v7, 0.7853982 }
  0x75   :  { %v787_v39 = vadd.f32 %v786_v2, %v784_v13 }
  0x76   :  { %v875_v61 = vadd.s32 4294967169, %v266_v32  ;;  %v270_v26 = vor.u32 8388608, %v269_v56 }
  0x77   :  { %v790_v19 = vadd.f32 %v789_v36, %v787_v39 }
  0x78   :  { %v272_v38 = vadd.s32 1, %v875_v61  ;;  %v310_v46 = vshll.u32 %v270_v26, 8 }
  0x79   :  { %v793_v20 = vadd.f32 %v792_v37, %v790_v19 }
  0x7a   :  { %vm273_vm5 = vcmp.gt.s32.totalorder %v272_v38, 0 }
  0x7b   :  { %v274_v28 = vsel %vm273_vm5, %v272_v38, 0  ;;  %v813_v41 = vadd.f32 %v811_v60, %v793_v20  ;;  %vm354_vm5 = vweird.f32 %v1285_v8 }
  0x7c   :  { %v276_v40 = vand.u32 31, %v274_v28  ;;  %v275_v43 = vshrl.u32 %v274_v28, 5 }
  0x7d   :  { %v814_v45 = vmul.f32 4.0, %v813_v41 }
  0x7e   :  { %v277_v44 = vsub.s32 32, %v276_v40  ;;  %v279_v49 = vshll.u32 %v970_v6, %v276_v40  ;;  %v282_v23 = vshll.u32 %v971_v9, %v276_v40  ;;  %v285_v42 = vshll.u32 %v972_v11, %v276_v40 }
  0x7f   :  { %v288_v47 = vshll.u32 %v973_v15, %v276_v40  ;;  %v291_v50 = vshll.u32 %v974_v17, %v276_v40  ;;  %v837_v54 = vsel %vm815_vm2, %v814_v45, 0.0  ;;  %vm294_vm4 = vcmp.lt.s32.totalorder %v275_v43, 1 }
  0x80   :  { %v278_v51 = vshrl.u32 %v970_v6, %v277_v44  ;;  %v280_v52 = vshrl.u32 %v971_v9, %v277_v44  ;;  %v283_v35 = vshrl.u32 %v972_v11, %v277_v44  ;;  %v286_v53 = vshrl.u32 %v973_v15, %v277_v44  ;;  %838 = vadd.xlane.f32.xlu1 %v837_v54 }
  0x81   :  { %v289_v55 = vshrl.u32 %v974_v17, %v277_v44  ;;  %v292_v57 = vshrl.u32 %v976_v34, %v277_v44  ;;  %vm295_vm7 = vcmp.lt.s32.totalorder %v275_v43, 2  ;;  %vm296_vm8 = vcmp.lt.s32.totalorder %v275_v43, 3 }
  0x82   :  { %v281_v63 = vor.u32 %v280_v52, %v279_v49  ;;  %v284_v18 = vor.u32 %v283_v35, %v282_v23  ;;  %v287_v21 = vor.u32 %v286_v53, %v285_v42  ;;  %vm297_vm9 = vcmp.lt.s32.totalorder %v275_v43, 4 }
  0x83   :  { %v290_v29 = vor.u32 %v289_v55, %v288_v47  ;;  %v293_v6 = vor.u32 %v292_v57, %v291_v50  ;;  %v717_v55 = vrot.slane %v1122_v25, %v1249_v16 }
  0x84   :  { %v298_v9 = vsel %vm294_vm4, %v278_v51, %v281_v63  ;;  %v299_v11 = vsel %vm297_vm9, %v287_v21, 2102212464  ;;  %v302_v58 = vsel %vm294_vm4, %v281_v63, %v284_v18  ;;  %v306_v15 = vsel %vm294_vm4, %v284_v18, %v287_v21 }
  0x85   :  { %v300_v59 = vsel %vm296_vm8, %v284_v18, %v299_v11  ;;  %v303_v24 = vsel %vm297_vm9, %v290_v29, 920167782  ;;  %v307_v33 = vsel %vm297_vm9, %v293_v6, 1326507024  ;;  %v678_v51 = vmul.f32 0.5, %v1119_v22 }
  0x86   :  { %v304_v17 = vsel %vm296_vm8, %v287_v21, %v303_v24  ;;  %v308_v5 = vsel %vm296_vm8, %v290_v29, %v307_v33  ;;  %v301_v34 = vsel %vm295_vm7, %v298_v9, %v300_v59  ;;  %v718_v7 = vcombine.high %v717_v55, %v717_v55 }
  0x87   :  { %v305_v10 = vsel %vm295_vm7, %v302_v58, %v304_v17  ;;  %v309_v1 = vsel %vm295_vm7, %v306_v15, %v308_v5  ;;  %v317_v14 = vmul.u32 %v310_v46, %v301_v34  ;;  %v693_v54 = vcombine.high %v678_v51, %v678_v51 }
  0x88   :  { %v1312_v12 = vmul.u32.u64.low %v310_v46, %v309_v1  ;;  %v1313_v0 = vmul.u32.u64.high %v310_v46, %v309_v1, %v1312_v12  ;;  %v1315_v27 = vmul.u32.u64.low %v310_v46, %v305_v10  ;;  %v1316_v31 = vmul.u32.u64.high %v310_v46, %v305_v10, %v1315_v27 }
  0x89   :  { %v700_v18 = vrot.slane %v693_v54, %v1249_v16  ;;  %v725_v9 = vrot.slane %v718_v7, %v1249_v16 }
  0x8a   :  { %vm319_vm10 = vc.u32 %v1313_v0, %v1315_v27  ;;  %v320_v48 = vadd.s32 1, %v1316_v31  ;;  %v318_v38 = vadd.s32 %v1315_v27, %v1313_v0 }
  0x8b   :  { %v701_v29 = vcombine.high %v700_v18, %v700_v18  ;;  %v726_v5 = vcombine.high %v725_v9, %v725_v9 }
  0x8c   :  { %v321_v30 = vsel %vm319_vm10, %v320_v48, %v1316_v31 }
  0x8d   :  { %v322_v32 = vadd.s32 %v321_v30, %v317_v14  ;;  %v708_v17 = vrot.slane %v701_v29, %v1249_v16 }
  0x8f   :  { %v323_v13 = vadd.s32 536870912, %v322_v32 }
  0x91   :  { %v324_v2 = vshrl.u32 %v323_v13, 30 }
  0x93   :  { %v325_v36 = vshll.u32 %v324_v2, 30  ;;  %v348_v42 = vsub.s32 4, %v324_v2 }
  0x95   :  { %v326_v4 = vsub.s32 %v322_v32, %v325_v36  ;;  %v349_v50 = vsel %vm264_vm12, %v348_v42, %v324_v2 }
  0x96   :  { %v351_v35 = vsel %vm263_vm13, 0, %v349_v50 }
  0x97   :  { %v328_v61 = vsub.s32 0, %v326_v4  ;;  %v458_v53 = vadd.s32 3, %v351_v35  ;;  %v355_v57 = vand.u32 3, %v351_v35 }
  0x99   :  { %v876_v39 = vmin.u32 %v328_v61, %v326_v4  ;;  %v459_v63 = vand.u32 3, %v458_v53  ;;  %vm360_vm14 = vcmp.eq.s32.totalorder %v355_v57, 2  ;;  %vm357_vm0 = vcmp.eq.s32.totalorder %v355_v57, 0 }
  0x9a   :  { %vm356_vm3 = vcmp.lt.s32.totalorder %v355_v57, 2 }
  0x9b   :  { %v330_v37 = vclz %v876_v39  ;;  %vm464_vm15 = vcmp.eq.s32.totalorder %v459_v63, 2  ;;  %vm461_vm1 = vcmp.eq.s32.totalorder %v459_v63, 0  ;;  %vm460_vm6 = vcmp.lt.s32.totalorder %v459_v63, 2 }
  0x9d   :  { %v877_v56 = vadd.s32 4294967294, %v330_v37 }
  0x9f   :  { %vm878_vm11 = vcmp.lt.s32.totalorder %v877_v56, 0 }
  0xa0   :  { %v333_v19 = vsel %vm878_vm11, 0, %v877_v56 }
  0xa1   :  { %v334_v60 = vsub.s32 32, %v333_v19  ;;  %v335_v20 = vshll.u32 %v326_v4, %v333_v19  ;;  %v338_v26 = vsub.s32 4294967266, %v333_v19 }
  0xa3   :  { %v336_v28 = vshrl.u32 %v318_v38, %v334_v60  ;;  %v339_v40 = vadd.s32 127, %v338_v26 }
  0xa5   :  { %v337_v41 = vor.u32 %v336_v28, %v335_v20  ;;  %v340_v43 = vshll.u32 %v339_v40, 23 }
  0xa7   :  { %v341_v44 = vor.u32 4788187, %v340_v43  ;;  %v344_v49 = vcvt.s32.f32 %v337_v41 }
  0xa9   :  { %v342_v23 = vand.u32 2147483647, %v341_v44 }
  0xab   :  { %v345_v45 = vmul.f32 %v344_v49, %v342_v23 }
  0xad   :  { %v346_v47 = vxor.u32 2147483648, %v345_v45 }
  0xaf   :  { %v347_v46 = vsel %vm264_vm12, %v346_v47, %v345_v45 }
  0xb0   :  { %v350_v52 = vsel %vm263_vm13, %v1285_v8, %v347_v46 }
  0xb1   :  { %939 = vcosq.f32 %v350_v52 }
  0xb2   :  { %941 = vsinq.f32 %v350_v52 }
  0xb7   :  { %v818_v37 = vpop.xlane.xlu0 %817 }
  0xbb   :  { %v940_v21 = vpop.eup %939 }
  0xbc   :  { %v942_v22 = vpop.eup %941  ;;  %v361_v6 = vxor.u32 2147483648, %v940_v21 }
  0xbd   :  { %v358_v11 = vxor.u32 2147483648, %v942_v22 }
  0xbe   :  { %v362_v25 = vsel %vm360_vm14, %v361_v6, %v942_v22  ;;  %v466_v58 = vsel %vm464_vm15, %v361_v6, %v942_v22 }
  0xbf   :  { %v359_v15 = vsel %vm357_vm0, %v940_v21, %v358_v11  ;;  %v463_v59 = vsel %vm461_vm1, %v940_v21, %v358_v11 }
  0xc0   :  { %v363_v24 = vsel %vm356_vm3, %v359_v15, %v362_v25  ;;  %v467_v33 = vsel %vm460_vm6, %v463_v59, %v466_v58 }
  0xc1   :  { %v364_v34 = vsel %vm354_vm5, nan, %v363_v24  ;;  %v468_v10 = vsel %vm354_vm5, nan, %v467_v33 }
  0xc2   :  { %v676_v1 = vsub.f32 %v364_v34, %v1278_v62  ;;  %v677_v12 = vsub.f32 %v468_v10, %v1282_v3  ;;  %v819_v62 = vrot.slane %v818_v37, 4 }
  0xc4   :  { %v710_v0 = vmul.f32 %v708_v17, %v676_v1  ;;  %v728_v27 = vmul.f32 %v726_v5, %v677_v12  ;;  %v729_v31 = vmul.f32 %v726_v5, %v676_v1  ;;  %v730_v14 = vmul.f32 %v708_v17, %v677_v12 }
  0xc5   :  { %v820_v38 = vadd.f32 %v819_v62, %v818_v37 }
  0xc6   :  { %v731_v8 = vadd.f32 %v728_v27, %v710_v0  ;;  %v733_v48 = vsub.f32 %v710_v0, %v728_v27  ;;  %v736_v30 = vsub.f32 %v729_v31, %v730_v14  ;;  %v739_v32 = vadd.f32 %v730_v14, %v729_v31 }
  0xc7   :  { %v821_v19 = vrot.slane %v820_v38, 2 }
  0xc8   :  { %v732_v13 = vand.u32 2147483647, %v731_v8  ;;  %v734_v2 = vand.u32 2147483647, %v733_v48  ;;  %v737_v36 = vand.u32 2147483647, %v736_v30 }
  0xc9   :  { %v740_v16 = vand.u32 2147483647, %v739_v32  ;;  %v822_v60 = vadd.f32 %v821_v19, %v820_v38 }
  0xca   :  { %v735_v4 = vadd.f32 %v734_v2, %v732_v13 }
  0xcb   :  { %v823_v20 = vrot.slane %v822_v60, 1 }
  0xcc   :  { %v738_v61 = vadd.f32 %v737_v36, %v735_v4 }
  0xcd   :  { %v824_v26 = vadd.f32 %v823_v20, %v822_v60 }
  0xce   :  { %v741_v39 = vadd.f32 %v740_v16, %v738_v61 }
  0xcf   :  { %899 = vpush %v824_v26 }
  0xd0   :  { %v742_v56 = vmul.f32 4.0, %v741_v39 }
  0xd2   :  { %v826_v3 = vsel %vm815_vm2, %v742_v56, 0.0  ;;  %vm850_vm2 = vcmask 0  }
  0xd3   :  { %827 = vadd.xlane.f32.xlu0 %v826_v3 }
 0x100   :  { %s900_s4 = spop %899 }
 0x10d   :  { %v839_v28 = vpop.xlane.xlu1 %838 }
 0x10e   :  { %v840_v40 = vrot.slane %v839_v28, 4 }
 0x110   :  { %v841_v41 = vadd.f32 %v840_v40, %v839_v28 }
 0x112   :  { %v842_v43 = vrot.slane %v841_v41, 2 }
 0x114   :  { %v843_v42 = vadd.f32 %v842_v43, %v841_v41 }
 0x116   :  { %v844_v50 = vrot.slane %v843_v42, 1 }
 0x118   :  { %v845_v52 = vadd.f32 %v844_v50, %v843_v42 }
 0x160   :  { %v828_v44 = vpop.xlane.xlu0 %827 }
 0x161   :  { %v829_v49 = vrot.slane %v828_v44, 4 }
 0x163   :  { %v830_v23 = vadd.f32 %v829_v49, %v828_v44 }
 0x165   :  { %v831_v45 = vrot.slane %v830_v23, 2 }
 0x167   :  { %v832_v47 = vadd.f32 %v831_v45, %v830_v23 }
 0x169   :  { %v833_v46 = vrot.slane %v832_v47, 1 }
 0x16b   :  { %v834_v51 = vadd.f32 %v833_v46, %v832_v47 }
 0x16d   :  { %901 = vpush %v834_v51 }
 0x16e   :  { %903 = vpush %v845_v52 }
 0x19e   :  { %s902_s7 = spop %901 }
 0x19f   :  { %s836_s11 = sadd.f32 %s902_s7, %s900_s4  ;;  %s904_s12 = spop %903 }
 0x1a1   :  { %s847_s5 = sadd.f32 %s904_s12, %s836_s11 }
 0x1a3   :  { %s848_s1 = smul.f32 0.0125, %s847_s5 }
 0x1a5   :  { %v849_v35 = vstv %s848_s1 }
 0x1a6   :  { %851 = vst.msk [vmem:[#allocation2] sm:$0x1] %vm850_vm2, %v849_v35 }
 0x1a7   :  { %954 = shalt.err (!%p951_p4)
}
 0x1a8   :  { %s955_s17 = scalar_lea.hbm %s1356_s8, 16 }
 0x1a9   :  { %p956_p5 = scmp.ne.s32.totalorder %s1356_s8, %s955_s17  ;;  %p959_p6 = scmp.lt.u32.totalorder %s955_s17, %s1356_s8 }
 0x1ab   :  { %p961_p7 = pnand %p959_p6, %p956_p5 }
 0x1ad   :  { %964 = shalt.err (!%p961_p7)
}
 0x1ae   :  { %861 = dma.vmem_to_hbm [thread:$0]  %s859_s0, 16, %s1356_s8, [#allocation3]  }
 0x1af   :  { %965 = dma.done.wait [#allocation3], 16  }
 0x1b0   :  { %966 = vsyncadd [#allocation3], 4294967280 }
 0x1b1   :  { %865 = vsyncpa [#allocation3], 1 }

</bundles_post_ra>
